<compile_context>
chip_gen: v7x
topology: tpu7x:2x2x1
jax: 0.10.0
libtpu: 0.0.40
codegen_flags: <defaults>
</compile_context>

<pallas_src>
import jax
import jax.numpy as jnp
from jax.experimental import pallas as pl
from jax.experimental.pallas import tpu as pltpu


def _round_up(n, m):
    return ((n + m - 1) // m) * m


def mlp_kernel(x_ref, w1_ref, b1_ref, w2_ref, b2_ref, o_ref):
    # fc1: (bm, K1) x (K1, H) — canonical (M,K)x(K,N); weights were
    # pre-transposed once in the wrapper, so no per-step RHS transpose.
    h = jnp.dot(x_ref[...], w1_ref[...], preferred_element_type=jnp.float32)
    h = jnp.maximum(h + b1_ref[...], 0.0)          # bias + ReLU in f32 (VPU)
    # fc2: (bm, H) x (H, H), f32 accumulate.
    o = jnp.dot(h.astype(w2_ref.dtype), w2_ref[...],
                preferred_element_type=jnp.float32)
    o_ref[...] = (o + b2_ref[...]).astype(o_ref.dtype)


def net_forward(x, w1, b1, w2, b2, *, bm=None, mxu_dtype=jnp.bfloat16,
                out_dtype=None, min_kernel_rows=0):
    """Fused MLP forward: fc2(relu(fc1(x))).

    x:  (B, D_in) activations.
    w1: (H, D_in), b1: (H,)  -- fc1 params, PyTorch (out, in) layout.
    w2: (H, H),   b2: (H,)   -- fc2 params.
    bm: row tile; auto-sized if None (single step for small B, >=2 parallel
        steps for large B, capped at 2048 rows).
    mxu_dtype: MXU operand dtype (default bf16 fast path on v5e/v6e/v7x);
        pass jnp.float32 for strict parity with the PyTorch f32 module
        (f32 MXU matmuls may still use a bf16-pass decomposition by default).
    out_dtype: output dtype (default x.dtype); jnp.bfloat16 halves the
        dominant output HBM write when downstream tolerates it.
    min_kernel_rows: route batches smaller than this to plain XLA (the kernel
        launch + fixed per-step cost dominates ns-scale work at tiny B).
    """
    B, d_in = x.shape
    H = w1.shape[0]
    if out_dtype is None:
        out_dtype = x.dtype

    if B < min_kernel_rows:
        # Tiny batch: let XLA fuse it; no kernel-level tuning helps here.
        h = jnp.maximum(x @ w1.T + b1, 0.0)
        return (h @ w2.T + b2).astype(out_dtype)

    compute_dtype = jnp.dtype(mxu_dtype) if mxu_dtype is not None else jnp.dtype(x.dtype)
    in_itemsize = compute_dtype.itemsize
    out_itemsize = jnp.dtype(out_dtype).itemsize
    # Sublane packing: 8 rows/vreg for 32-bit, 16 for 16-bit, 32 for 8-bit.
    align = {4: 8, 2: 16, 1: 32}.get(in_itemsize, 8)

    if bm is None:
        if B <= 256:
            bm = _round_up(max(B, 1), align)             # one grid step
        else:
            # >=2 grid steps so dimension_semantics=("parallel",) can shard
            # across v7x's two TensorCores; cap the tile at 2048 rows.
            bm = min(2048, _round_up(pl.cdiv(B, 2), align))
    bm = max(align, _round_up(bm, align))
    grid_m = pl.cdiv(B, bm)   # ragged tail handled by Pallas boundary blocks

    # Operand prep. Transposing the weights to (K, N) here is a one-time,
    # constant-foldable op for real model weights; in exchange both in-kernel
    # matmuls are the canonical MXU form (no per-step XLU transpose).
    x_in = x.astype(compute_dtype)
    w1_in = jnp.transpose(w1).astype(compute_dtype)      # (D_in, H)
    w2_in = jnp.transpose(w2).astype(compute_dtype)      # (H, H)
    b1_2d = b1.reshape(1, H).astype(jnp.float32)
    b2_2d = b2.reshape(1, H).astype(jnp.float32)

    # Advisory cost hint for XLA scheduling around this custom call.
    flops = 2 * B * (d_in * H + H * H)
    bytes_accessed = (
        B * d_in * in_itemsize                 # x
        + (H * d_in + H * H) * in_itemsize     # W1, W2
        + 2 * H * 4                            # biases
        + B * H * out_itemsize                 # output
    )
    cost = pl.CostEstimate(flops=flops, transcendentals=0,
                           bytes_accessed=bytes_accessed)

    # Generation-aware VMEM budget: physical capacity minus compiler headroom
    # (v7x: ~56 MiB usable, v5e/v6e: up to ~120 MiB), but never more than we
    # could plausibly use (2x the buffer estimate + slack).
    try:
        info = pltpu.get_tpu_info()
        vmem_cap = int(getattr(info, "vmem_capacity_bytes", 64 * 1024 * 1024))
    except Exception:
        vmem_cap = 64 * 1024 * 1024            # conservative (v7x per-TC)
    vmem_needed = (
        (H * d_in + H * H) * in_itemsize + 2 * H * 4     # resident params
        + 2 * bm * d_in * in_itemsize                    # double-buffered x
        + 2 * bm * H * out_itemsize                      # double-buffered out
    )
    vmem_limit = int(min(vmem_cap - (8 << 20),
                         max(32 << 20, 2 * vmem_needed + (8 << 20))))

    resident = pl.Buffered(1)   # single-buffer the constant-index operands

    out = pl.pallas_call(
        mlp_kernel,
        out_shape=jax.ShapeDtypeStruct((B, H), out_dtype),
        grid_spec=pltpu.PrefetchScalarGridSpec(
            num_scalar_prefetch=0,
            grid=(grid_m,),
            in_specs=[
                # streamed activation tile (default double buffering)
                pl.BlockSpec((bm, d_in), lambda i: (i, 0)),
                # resident params: constant index_map -> single buffer
                pl.BlockSpec((d_in, H), lambda i: (0, 0), pipeline_mode=resident),  # W1^T
                pl.BlockSpec((1, H),    lambda i: (0, 0), pipeline_mode=resident),  # b1
                pl.BlockSpec((H, H),    lambda i: (0, 0), pipeline_mode=resident),  # W2^T
                pl.BlockSpec((1, H),    lambda i: (0, 0), pipeline_mode=resident),  # b2
            ],
            out_specs=pl.BlockSpec((bm, H), lambda i: (i, 0)),
        ),
        compiler_params=pltpu.CompilerParams(
            dimension_semantics=("parallel",),   # shards across TCs when grid >= 2
            vmem_limit_bytes=vmem_limit,
        ),
        cost_estimate=cost,
    )(x_in, w1_in, b1_2d, w2_in, b2_2d)

    return out


def net_ref(x, w1, b1, w2, b2):
    h = jnp.maximum(x @ w1.T + b1, 0.0)
    return h @ w2.T + b2


if __name__ == "__main__":
    # Small, deterministic setup consistent with the module:
    # input_dim=32, hidden_dim=128, batch=8.
    B, D_IN, H = 8, 32, 128
    key = jax.random.PRNGKey(0)
    kx, k1, k2, k3, k4 = jax.random.split(key, 5)

    x = jax.random.normal(kx, (B, D_IN), dtype=jnp.float32)
    # PyTorch Linear shapes: weight (out, in), bias (out,)
    w1 = jax.random.normal(k1, (H, D_IN), dtype=jnp.float32) * 0.05
    b1 = jax.random.normal(k2, (H,), dtype=jnp.float32) * 0.05
    w2 = jax.random.normal(k3, (H, H), dtype=jnp.float32) * 0.05
    b2 = jax.random.normal(k4, (H,), dtype=jnp.float32) * 0.05

    ref = net_ref(x, w1, b1, w2, b2)

    # 1) Default fast path: bf16 MXU operands, f32 accumulate/epilogue, f32 out.
    out = jax.block_until_ready(net_forward(x, w1, b1, w2, b2))
    assert out.shape == (B, H) and out.dtype == jnp.float32
    assert jnp.allclose(out, ref, atol=3e-2, rtol=3e-2), "bf16-MXU mismatch vs reference"

    # 2) Strict f32 path (parity with the PyTorch f32 module).
    out_f32 = jax.block_until_ready(
        net_forward(x, w1, b1, w2, b2, mxu_dtype=jnp.float32))
    assert jnp.allclose(out_f32, ref, atol=1e-4, rtol=1e-4), "f32 mismatch vs reference"

    # 3) Narrow output write-back (bf16 out): halves output HBM traffic.
    out_bf = jax.block_until_ready(
        net_forward(x, w1, b1, w2, b2, out_dtype=jnp.bfloat16))
    assert out_bf.dtype == jnp.bfloat16
    assert jnp.allclose(out_bf.astype(jnp.float32), ref, atol=6e-2, rtol=6e-2), \
        "bf16-out mismatch vs reference"

    # 4) Ragged batch: no full-array pad; Pallas masks the boundary block.
    xr = jax.random.normal(kx, (13, D_IN), dtype=jnp.float32)
    out_r = jax.block_until_ready(
        net_forward(xr, w1, b1, w2, b2, mxu_dtype=jnp.float32))
    assert out_r.shape == (13, H)
    assert jnp.allclose(out_r, net_ref(xr, w1, b1, w2, b2), atol=1e-4, rtol=1e-4), \
        "ragged-batch mismatch vs reference"

    # 5) Larger batch -> grid of >=2 "parallel" steps (v7x megacore) with a
    #    ragged last block.
    xl = jax.random.normal(kx, (600, D_IN), dtype=jnp.float32)
    out_l = jax.block_until_ready(
        net_forward(xl, w1, b1, w2, b2, mxu_dtype=jnp.float32))
    assert out_l.shape == (600, H)
    assert jnp.allclose(out_l, net_ref(xl, w1, b1, w2, b2), atol=1e-4, rtol=1e-4), \
        "large-batch mismatch vs reference"

    print("KERNEL_OK")
</pallas_src>

<mosaic_0001>
module attributes {stable_mosaic.version = 11 : i64} {
  func.func @mlp_kernel(%arg0: i32, %arg1: memref<16x32xbf16, #tpu.memory_space<vmem>>, %arg2: memref<32x128xbf16, #tpu.memory_space<vmem>>, %arg3: memref<1x128xf32, #tpu.memory_space<vmem>>, %arg4: memref<128x128xbf16, #tpu.memory_space<vmem>>, %arg5: memref<1x128xf32, #tpu.memory_space<vmem>>, %arg6: memref<16x128xf32, #tpu.memory_space<vmem>>) attributes {dimension_semantics = [#tpu.dimension_semantics<parallel>], iteration_bounds = array<i64: 1>, scalar_prefetch = 0 : i64, scratch_operands = 0 : i64, tpu.core_type = #tpu.core_type<tc>, window_params = [{transform_indices = @transform_0, window_bounds = array<i64: 16, 32>}, {pipeline_mode = #tpu.pipeline_mode<synchronous>, transform_indices = @transform_1, window_bounds = array<i64: 32, 128>}, {pipeline_mode = #tpu.pipeline_mode<synchronous>, transform_indices = @transform_2, window_bounds = array<i64: 1, 128>}, {pipeline_mode = #tpu.pipeline_mode<synchronous>, transform_indices = @transform_3, window_bounds = array<i64: 128, 128>}, {pipeline_mode = #tpu.pipeline_mode<synchronous>, transform_indices = @transform_4, window_bounds = array<i64: 1, 128>}, {transform_indices = @transform_5, window_bounds = array<i64: 16, 128>}]} {
    %c0 = arith.constant 0 : index
    %c0_0 = arith.constant 0 : index
    %0 = vector.load %arg1[%c0, %c0_0] : memref<16x32xbf16, #tpu.memory_space<vmem>>, vector<16x32xbf16>
    %c0_1 = arith.constant 0 : index
    %c0_2 = arith.constant 0 : index
    %1 = vector.load %arg2[%c0_1, %c0_2] : memref<32x128xbf16, #tpu.memory_space<vmem>>, vector<32x128xbf16>
    %cst = arith.constant dense<0.000000e+00> : vector<16x128xf32>
    %2 = tpu.matmul %0, %1, %cst {dimension_numbers = #tpu.dot_dimension_numbers<[1], [0], [0], [1], [0, 0, 1, 1], [], []>} : vector<16x32xbf16>, vector<32x128xbf16>, vector<16x128xf32> -> vector<16x128xf32>
    %c0_3 = arith.constant 0 : index
    %c0_4 = arith.constant 0 : index
    %3 = vector.load %arg3[%c0_3, %c0_4] : memref<1x128xf32, #tpu.memory_space<vmem>>, vector<1x128xf32>
    %4 = vector.broadcast %3 : vector<1x128xf32> to vector<16x128xf32>
    %5 = arith.addf %2, %4 : vector<16x128xf32>
    %cst_5 = arith.constant 0.000000e+00 : f32
    %6 = vector.broadcast %cst_5 : f32 to vector<16x128xf32>
    %7 = arith.maximumf %5, %6 : vector<16x128xf32>
    %8 = arith.truncf %7 : vector<16x128xf32> to vector<16x128xbf16>
    %c0_6 = arith.constant 0 : index
    %c0_7 = arith.constant 0 : index
    %9 = vector.load %arg4[%c0_6, %c0_7] : memref<128x128xbf16, #tpu.memory_space<vmem>>, vector<128x128xbf16>
    %cst_8 = arith.constant dense<0.000000e+00> : vector<16x128xf32>
    %10 = tpu.matmul %8, %9, %cst_8 {dimension_numbers = #tpu.dot_dimension_numbers<[1], [0], [0], [1], [0, 0, 1, 1], [], []>} : vector<16x128xbf16>, vector<128x128xbf16>, vector<16x128xf32> -> vector<16x128xf32>
    %c0_9 = arith.constant 0 : index
    %c0_10 = arith.constant 0 : index
    %11 = vector.load %arg5[%c0_9, %c0_10] : memref<1x128xf32, #tpu.memory_space<vmem>>, vector<1x128xf32>
    %12 = vector.broadcast %11 : vector<1x128xf32> to vector<16x128xf32>
    %13 = arith.addf %10, %12 : vector<16x128xf32>
    %c0_11 = arith.constant 0 : index
    %c0_12 = arith.constant 0 : index
    %14 = vector.load %arg6[%c0_11, %c0_12] : memref<16x128xf32, #tpu.memory_space<vmem>>, vector<16x128xf32>
    tpu.vector_store %arg6[%c0_11, %c0_12], %13 {strides = array<i32>} : memref<16x128xf32, #tpu.memory_space<vmem>>, vector<16x128xf32>,
    return
  }
  func.func @transform_0(%arg0: i32) -> (i32, i32) {
    %c0_i32 = arith.constant 0 : i32
    %c0_i32_0 = arith.constant 0 : i32
    return %arg0, %c0_i32 : i32, i32
  }
  func.func @transform_1(%arg0: i32) -> (i32, i32) {
    %c0_i32 = arith.constant 0 : i32
    %c0_i32_0 = arith.constant 0 : i32
    %c0_i32_1 = arith.constant 0 : i32
    return %c0_i32, %c0_i32_0 : i32, i32
  }
  func.func @transform_2(%arg0: i32) -> (i32, i32) {
    %c0_i32 = arith.constant 0 : i32
    %c0_i32_0 = arith.constant 0 : i32
    %c0_i32_1 = arith.constant 0 : i32
    return %c0_i32, %c0_i32_0 : i32, i32
  }
  func.func @transform_3(%arg0: i32) -> (i32, i32) {
    %c0_i32 = arith.constant 0 : i32
    %c0_i32_0 = arith.constant 0 : i32
    %c0_i32_1 = arith.constant 0 : i32
    return %c0_i32, %c0_i32_0 : i32, i32
  }
  func.func @transform_4(%arg0: i32) -> (i32, i32) {
    %c0_i32 = arith.constant 0 : i32
    %c0_i32_0 = arith.constant 0 : i32
    %c0_i32_1 = arith.constant 0 : i32
    return %c0_i32, %c0_i32_0 : i32, i32
  }
  func.func @transform_5(%arg0: i32) -> (i32, i32) {
    %c0_i32 = arith.constant 0 : i32
    %c0_i32_0 = arith.constant 0 : i32
    return %arg0, %c0_i32 : i32, i32
  }
}

</mosaic_0001>

<bundles_post_ra>
// kernel: tpu_custom_call.1
= control target key start
LH: loop header
LB: loop body
LE: loop exit
PB: predicated region body
PF: predicated region fallthrough
CT: control target
= control target key end

     0   :  { %10 = vsyncpa [#allocation3], 0  ;;  %s553_s0 = inlined_call_operand.hbm [shape: bf16[8,32], index: 0, kind: input, shape index: {}]   ;;  %s554_s1 = inlined_call_operand.hbm [shape: bf16[32,128], index: 1, kind: input, shape index: {}]   ;;  %s555_s2 = inlined_call_operand.vmem [shape: f32[1,128], index: 2, kind: input, shape index: {}]   ;;  %s556_s3 = inlined_call_operand.hbm [shape: bf16[128,128], index: 3, kind: input, shape index: {}]   ;;  %s557_s4 = inlined_call_operand.vmem [shape: f32[1,128], index: 4, kind: input, shape index: {}]   ;;  %s558_s5 = inlined_call_operand.hbm [shape: f32[8,128], index: 5, kind: output, shape index: {}]  }
   0x1   :  { %11 = vsyncpa [#allocation6], 0 }
   0x2   :  { %12 = vsyncpa [#allocation4], 0 }
   0x3   :  { %17 = vsyncadd [#allocation3], 64  ;;  %s442_s18 = smov [#allocation5]   ;;  %s443_s20 = smov [#allocation2]  }
   0x4   :  { %s30_s19 = sshll.u32 %s442_s18, 4  ;;  %s18_s21 = sshll.u32 %s443_s20, 4  ;;  %s31_s19 = int_to_ptr.vmem [resolvable:$true] %s30_s19  ;;  %s482_s21 = int_to_ptr.vmem [resolvable:$true] %s18_s21 }
   0x5   :  { %s348_s24 = scalar_lea.hbm %s554_s1, 256 }
   0x6   :  { %p349_p0 = scmp.ne.s32.totalorder %s554_s1, %s348_s24  ;;  %p352_p1 = scmp.lt.u32.totalorder %s348_s24, %s554_s1 }
   0x8   :  { %p354_p2 = pnand %p352_p1, %p349_p0 }
   0xa   :  { %357 = shalt.err (!%p354_p2)
}
   0xb   :  { %s358_s29 = scalar_lea.vmem %s31_s19, 256  ;;  %p363_p4 = scmp.lt.s32.totalorder %s31_s19, %s31_s19 }
   0xc   :  { %p359_p3 = scmp.ne.s32.totalorder %s31_s19, %s358_s29  ;;  %p364_p5 = scmp.lt.s32.totalorder %s358_s29, %s358_s29 }
   0xe   :  { %p365_p6 = por %p364_p5, %p363_p4 }
  0x10   :  { %p366_p7 = pnand %p365_p6, %p359_p3 }
  0x12   :  { %369 = shalt.err (!%p366_p7)
}
  0x13   :  { %s444_s30 = smov 64   ;;  %s445_s6 = smov 4  }
  0x14   :  { %36 = dma.hbm_to_vmem [thread:$0]  %s554_s1, 256, %s31_s19, [#allocation6], %s444_s30, %s444_s30, %s445_s6  }
  0x15   :  { %s370_s11 = scalar_lea.hbm %s553_s0, 64 }
  0x16   :  { %p371_p8 = scmp.ne.s32.totalorder %s553_s0, %s370_s11  ;;  %p374_p9 = scmp.lt.u32.totalorder %s370_s11, %s553_s0 }
  0x18   :  { %p376_p10 = pnand %p374_p9, %p371_p8 }
  0x1a   :  { %379 = shalt.err (!%p376_p10)
}
  0x1b   :  { %s380_s16 = scalar_lea.vmem %s482_s21, 64  ;;  %s384_s1 = scalar_lea.vmem %s482_s21, 128 }
  0x1c   :  { %p381_p11 = scmp.ne.s32.totalorder %s482_s21, %s380_s16  ;;  %p385_p12 = scmp.lt.s32.totalorder %s482_s21, %s482_s21 }
  0x1d   :  { %p386_p13 = scmp.lt.s32.totalorder %s384_s1, %s380_s16 }
  0x1f   :  { %p387_p0 = por %p386_p13, %p385_p12 }
  0x21   :  { %p388_p1 = pnand %p387_p0, %p381_p11 }
  0x23   :  { %391 = shalt.err (!%p388_p1)
}
  0x24   :  { %24 = dma.hbm_to_vmem [thread:$0]  %s553_s0, 64, %s482_s21, [#allocation3], %s444_s30, %s444_s30, %s445_s6  }
  0x25   :  { %s446_s19 = smov [#allocation7]   ;;  %s392_s24 = scalar_lea.hbm %s556_s3, 1024 }
  0x26   :  { %s44_s20 = sshll.u32 %s446_s19, 4  ;;  %p393_p2 = scmp.ne.s32.totalorder %s556_s3, %s392_s24  ;;  %s45_s20 = int_to_ptr.vmem [resolvable:$true] %s44_s20 }
  0x27   :  { %p396_p3 = scmp.lt.u32.totalorder %s392_s24, %s556_s3 }
  0x29   :  { %p398_p4 = pnand %p396_p3, %p393_p2 }
  0x2b   :  { %401 = shalt.err (!%p398_p4)
}
  0x2c   :  { %s402_s29 = scalar_lea.vmem %s45_s20, 1024  ;;  %p407_p6 = scmp.lt.s32.totalorder %s45_s20, %s45_s20 }
  0x2d   :  { %p403_p5 = scmp.ne.s32.totalorder %s45_s20, %s402_s29  ;;  %p408_p7 = scmp.lt.s32.totalorder %s402_s29, %s402_s29 }
  0x2f   :  { %p409_p8 = por %p408_p7, %p407_p6 }
  0x31   :  { %p410_p9 = pnand %p409_p8, %p403_p5 }
  0x33   :  { %413 = shalt.err (!%p410_p9)
}
  0x34   :  { %50 = dma.hbm_to_vmem [thread:$0]  %s556_s3, 1024, %s45_s20, [#allocation6], %s444_s30, %s444_s30, %s445_s6  }
  0x35   :  { %436 = dma.done.wait [#allocation3], 128  }
  0x36   :  { %437 = vsyncadd [#allocation3], 4294967168 }
  0x37   :  { %438 = dma.done.wait [#allocation6], 1280  }
  0x38   :  { %439 = vsyncadd [#allocation6], 4294966016  ;;  %v447_v0 = vmov 0.0   ;;  %vm448_vm0 = vmmov 0   ;;  %v337_v1 = vld [vmem:[#allocation5] sm:$0xff]   ;;  %v338_v2 = vld [vmem:[#allocation5 + $0x8] sm:$0xff]  }
  0x39   :  { %299 = vmatprep.subr.bf16.mxu0 %v447_v0  ;;  %303 = vmatprep.mubr.msk.bf16.mxu0 %vm448_vm0, %v447_v0  ;;  %v340_v3 = vld [vmem:[#allocation7] sm:$0xff]   ;;  %v339_v4 = vld [vmem:[#allocation2] sm:$0xff]   ;;  %vm93_vm1 = vcmask 261120   ;;  %v342_v6 = vld [vmem:[#allocation7 + $0x10] sm:$0xff]  }
  0x3a   :  { %307 = vmatprep.subr.bf16.mxu1 %v447_v0  ;;  %323 = vmatprep.mubr.msk.bf16.mxu1 %vm448_vm0, %v447_v0  ;;  %v341_v5 = vld [vmem:[#allocation7 + $0x8] sm:$0xff]   ;;  %v343_v7 = vld [vmem:[#allocation7 + $0x18] sm:$0xff]   ;;  %v344_v8 = vld [vmem:[#allocation7 + $0x20] sm:$0xff]  }
  0x3b   :  { %300 = vmatpush3.bf16.msra.mxu0 %v337_v1  ;;  %308 = vmatpush3.bf16.msra.mxu1 %v340_v3  ;;  %v345_v9 = vld [vmem:[#allocation7 + $0x28] sm:$0xff]   ;;  %v346_v10 = vld [vmem:[#allocation7 + $0x30] sm:$0xff]   ;;  %v347_v11 = vld [vmem:[#allocation7 + $0x38] sm:$0xff]  }
  0x3c   :  { %301 = vmatprep.subr.bf16.mxu0 %v447_v0  ;;  %309 = vmatprep.subr.bf16.mxu1 %v447_v0  ;;  %v273_v12 = vld [vmem:[%s555_s2] ss:$0 sm:$0xff] }
  0x3d   :  { %v278_v22 = vld [vmem:[%s557_s4] ss:$0 sm:$0xff] }
  0x3f   :  { %302 = vmatpush3.bf16.msra.mxu0 %v338_v2  ;;  %310 = vmatpush3.bf16.msra.mxu1 %v341_v5 }
  0x40   :  { %311 = vmatprep.subr.bf16.mxu1 %v447_v0 }
  0x42   :  { %304 = vmatmul.mubr.msk.bf16.vlgmr.msra.gmra.mrb[0].mxu0 %vm93_vm1, %v339_v4 }
  0x43   :  { %312 = vmatpush3.bf16.msra.mxu1 %v342_v6 }
  0x44   :  { %313 = vmatprep.subr.bf16.mxu1 %v447_v0 }
  0x47   :  { %314 = vmatpush3.bf16.msra.mxu1 %v343_v7 }
  0x48   :  { %315 = vmatprep.subr.bf16.mxu1 %v447_v0 }
  0x4b   :  { %316 = vmatpush3.bf16.msra.mxu1 %v344_v8 }
  0x4c   :  { %317 = vmatprep.subr.bf16.mxu1 %v447_v0 }
  0x4f   :  { %318 = vmatpush3.bf16.msra.mxu1 %v345_v9 }
  0x50   :  { %319 = vmatprep.subr.bf16.mxu1 %v447_v0 }
  0x53   :  { %320 = vmatpush3.bf16.msra.mxu1 %v346_v10 }
  0x54   :  { %321 = vmatprep.subr.bf16.mxu1 %v447_v0 }
  0x57   :  { %322 = vmatpush3.bf16.msra.mxu1 %v347_v11 }
 0x115   :  { %v131_v13 = vpop.f32.mrb[0].mxu0 }
 0x116   :  { %v132_v14 = vadd.f32 %v273_v12, %v131_v13  ;;  %v305_v15 = vpop.f32.mrb[1].mxu0 }
 0x117   :  { %v134_v16 = vpop.f32.mrb[2].mxu0 }
 0x118   :  { %v135_v17 = vadd.f32 %v273_v12, %v134_v16  ;;  %v306_v18 = vpop.f32.mrb[3].mxu0  ;;  %v138_v19 = vmax.f32 %v132_v14, 0.0 }
 0x11a   :  { %v139_v20 = vmax.f32 %v135_v17, 0.0 }
 0x11c   :  { %v140_v21 = vpack.c.bf16 %v139_v20, %v138_v19 }
 0x11e   :  { %324 = vmatmul.mubr.bf16.vlgmr.msra.gmra.mrb[0].mxu1 %v140_v21 }
 0x1f1   :  { %v246_v23 = vpop.f32.mrb[0].mxu1 }
 0x1f2   :  { %v247_v24 = vadd.f32 %v278_v22, %v246_v23  ;;  %v325_v25 = vpop.f32.mrb[1].mxu1 }
 0x1f3   :  { %v249_v26 = vpop.f32.mrb[2].mxu1 }
 0x1f4   :  { %253 = vst [vmem:[#allocation8] sm:$0xff] %v247_v24  ;;  %v250_v27 = vadd.f32 %v278_v22, %v249_v26  ;;  %v326_v28 = vpop.f32.mrb[3].mxu1 }
 0x1f6   :  { %254 = vst [vmem:[#allocation8 + $0x8] sm:$0xff] %v250_v27 }
 0x1f7   :  { %259 = vsyncadd [#allocation4], 128  ;;  %s449_s2 = smov [#allocation8]  }
 0x1f8   :  { %s260_s8 = sshll.u32 %s449_s2, 4  ;;  %s261_s8 = int_to_ptr.vmem [resolvable:$true] %s260_s8 }
 0x1f9   :  { %s414_s9 = scalar_lea.vmem %s261_s8, 128  ;;  %s418_s10 = scalar_lea.vmem %s261_s8, 256 }
 0x1fa   :  { %p415_p10 = scmp.ne.s32.totalorder %s261_s8, %s414_s9  ;;  %p419_p11 = scmp.lt.s32.totalorder %s261_s8, %s261_s8 }
 0x1fb   :  { %p420_p12 = scmp.lt.s32.totalorder %s418_s10, %s414_s9 }
 0x1fd   :  { %p421_p13 = por %p420_p12, %p419_p11 }
 0x1ff   :  { %p422_p0 = pnand %p421_p13, %p415_p10 }
 0x201   :  { %425 = shalt.err (!%p422_p0)
}
 0x202   :  { %s426_s12 = scalar_lea.hbm %s558_s5, 128 }
 0x203   :  { %p427_p1 = scmp.ne.s32.totalorder %s558_s5, %s426_s12  ;;  %p430_p2 = scmp.lt.u32.totalorder %s426_s12, %s558_s5 }
 0x205   :  { %p432_p3 = pnand %p430_p2, %p427_p1 }
 0x207   :  { %435 = shalt.err (!%p432_p3)
}
 0x208   :  { %s450_s1 = smov 128   ;;  %s451_s17 = smov 8  }
 0x209   :  { %266 = dma.vmem_to_hbm [thread:$0]  %s261_s8, 128, %s558_s5, [#allocation4], %s450_s1, %s450_s1, %s451_s17  }
 0x20a   :  { %440 = dma.done.wait [#allocation4], 256  }
 0x20b   :  { %441 = vsyncadd [#allocation4], 4294967040 }
 0x20c   :  { %270 = vsyncpa [#allocation3], 1 }
 0x20d   :  { %271 = vsyncpa [#allocation6], 1 }
 0x20e   :  { %272 = vsyncpa [#allocation4], 1 }

</bundles_post_ra>
